<compile_context>
chip_gen: v6e
topology: v6e:2x2x1
jax: 0.10.0
libtpu: 0.0.40
codegen_flags: <defaults>
</compile_context>

<pallas_src>
import functools

import jax
import jax.numpy as jnp
from jax import lax
from jax.experimental import pallas as pl
from jax.experimental.pallas import tpu as pltpu

_SUBLANE = 8
_LANE = 128


def _round_up(n, m):
    return ((n + m - 1) // m) * m


def gcn2_kernel(x_ref, w1_ref, b1_ref, w2_ref, b2_ref, adj_ref, o_ref):
    """Fused: out = GCNConv2(relu(GCNConv1(x))) with the whole graph in VMEM."""
    x = x_ref[...]                                    # [Np, Fp]  f32
    adj = adj_ref[...]                                # [Np, Np]  f32 (self loops included)

    # Symmetric normalization coefficients (PyG gcn_norm: in-degree incl. self
    # loop).  Clamp to >= 1: exact for real nodes, keeps zero-padded rows finite.
    deg = jnp.maximum(jnp.sum(adj, axis=-1, keepdims=True), 1.0)   # [Np, 1]
    d_inv_sqrt = lax.rsqrt(deg)                                    # [Np, 1] (EUP)

    # ---- layer 1: h = relu( D^-1/2 A D^-1/2 (x @ W1) + b1 ) ----
    z1 = jnp.dot(x, w1_ref[...], preferred_element_type=jnp.float32)          # [Np, Hp]
    agg1 = jnp.dot(adj, d_inv_sqrt * z1, preferred_element_type=jnp.float32)  # [Np, Hp]
    h = jnp.maximum(d_inv_sqrt * agg1 + b1_ref[...], 0.0)

    # ---- layer 2: out = D^-1/2 A D^-1/2 (h @ W2) + b2 ----
    z2 = jnp.dot(h, w2_ref[...], preferred_element_type=jnp.float32)          # [Np, Op]
    agg2 = jnp.dot(adj, d_inv_sqrt * z2, preferred_element_type=jnp.float32)  # [Np, Op]

    # Single full-width, lane-dense store of the whole output block.
    o_ref[...] = d_inv_sqrt * agg2 + b2_ref[...]


@jax.jit
def gcn_forward_pallas(x, w1, b1, w2, b2, adj):
    n, f_in = x.shape
    hidden = w1.shape[1]
    out_dim = w2.shape[1]

    # Pad to TPU tile alignment: sublane multiple on N, lane multiple on every
    # feature dim.  Zero padding is exact for the real rows/cols (see kernel).
    n_p = _round_up(n, _SUBLANE)
    f_p = _round_up(f_in, _LANE)
    h_p = _round_up(hidden, _LANE)
    o_p = _round_up(out_dim, _LANE)

    x_p = jnp.pad(x, ((0, n_p - n), (0, f_p - f_in)))
    w1_p = jnp.pad(w1, ((0, f_p - f_in), (0, h_p - hidden)))
    b1_p = jnp.pad(b1, ((0, 0), (0, h_p - hidden)))
    w2_p = jnp.pad(w2, ((0, h_p - hidden), (0, o_p - out_dim)))
    b2_p = jnp.pad(b2, ((0, 0), (0, o_p - out_dim)))
    adj_p = jnp.pad(adj, ((0, n_p - n), (0, n_p - n)))

    vmem = pl.BlockSpec(memory_space=pltpu.MemorySpace.VMEM)
    out_p = pl.pallas_call(
        gcn2_kernel,
        out_shape=jax.ShapeDtypeStruct((n_p, o_p), jnp.float32),
        in_specs=[vmem] * 6,
        out_specs=vmem,
    )(x_p, w1_p, b1_p, w2_p, b2_p, adj_p)
    return out_p[:n, :out_dim]


def edge_index_to_adj(edge_index, num_nodes):
    """Dense adjacency: adj[i, j] = #edges j -> i; self loop added to every node
    that does not already have one (PyG add_remaining_self_loops)."""
    src, dst = edge_index[0], edge_index[1]
    adj = jnp.zeros((num_nodes, num_nodes), jnp.float32).at[dst, src].add(1.0)
    diag = jnp.diagonal(adj)
    adj = adj + jnp.diag(jnp.where(diag == 0.0, 1.0, 0.0))
    return adj


def glorot(key, shape):
    fan_in, fan_out = shape[-2], shape[-1]
    limit = (6.0 / (fan_in + fan_out)) ** 0.5
    return jax.random.uniform(key, shape, jnp.float32, -limit, limit)


def init_gcn_params(key, input_dim, hidden_dim, output_dim):
    k1, k2 = jax.random.split(key, 2)
    return {
        "w1": glorot(k1, (input_dim, hidden_dim)),
        "b1": jnp.zeros((1, hidden_dim), jnp.float32),
        "w2": glorot(k2, (hidden_dim, output_dim)),
        "b2": jnp.zeros((1, output_dim), jnp.float32),
    }


def gcn_forward(params, x, edge_index):
    adj = edge_index_to_adj(edge_index, x.shape[0])
    return gcn_forward_pallas(x, params["w1"], params["b1"],
                              params["w2"], params["b2"], adj)


def gcn_reference(params, x, edge_index):
    """Pure-JAX reference of the same GCN forward, for a correctness check."""
    adj = edge_index_to_adj(edge_index, x.shape[0])
    d_inv_sqrt = jnp.sum(adj, axis=-1, keepdims=True) ** -0.5

    def conv(z, w, b):
        return d_inv_sqrt * (adj @ (d_inv_sqrt * (z @ w))) + b

    h = jax.nn.relu(conv(x, params["w1"], params["b1"]))
    return conv(h, params["w2"], params["b2"])


if __name__ == "__main__":
    N = 16            # nodes
    INPUT_DIM = 8
    HIDDEN_DIM = 16
    OUTPUT_DIM = 8
    NUM_EDGES = 32

    key = jax.random.PRNGKey(0)
    kx, ke_src, ke_dst, kp = jax.random.split(key, 4)

    x = jax.random.normal(kx, (N, INPUT_DIM), jnp.float32)
    edge_index = jnp.stack([
        jax.random.randint(ke_src, (NUM_EDGES,), 0, N),
        jax.random.randint(ke_dst, (NUM_EDGES,), 0, N),
    ], axis=0)                                        # [2, NUM_EDGES]

    params = init_gcn_params(kp, INPUT_DIM, HIDDEN_DIM, OUTPUT_DIM)

    out = gcn_forward(params, x, edge_index)
    out = jax.block_until_ready(out)

    ref = gcn_reference(params, x, edge_index)
    assert out.shape == (N, OUTPUT_DIM)
    assert bool(jnp.all(jnp.isfinite(out)))
    assert bool(jnp.allclose(out, ref, atol=1e-4, rtol=1e-4))
    print("KERNEL_OK")
</pallas_src>

<mosaic_0001>
module attributes {stable_mosaic.version = 11 : i64} {
  func.func @gcn2_kernel(%arg0: memref<16x128xf32, #tpu.memory_space<vmem>>, %arg1: memref<128x128xf32, #tpu.memory_space<vmem>>, %arg2: memref<1x128xf32, #tpu.memory_space<vmem>>, %arg3: memref<128x128xf32, #tpu.memory_space<vmem>>, %arg4: memref<1x128xf32, #tpu.memory_space<vmem>>, %arg5: memref<16x16xf32, #tpu.memory_space<vmem>>, %arg6: memref<16x128xf32, #tpu.memory_space<vmem>>) attributes {dimension_semantics = [], scalar_prefetch = 0 : i64, scratch_operands = 0 : i64, tpu.core_type = #tpu.core_type<tc>} {
    %c0 = arith.constant 0 : index
    %c0_0 = arith.constant 0 : index
    %0 = vector.load %arg0[%c0, %c0_0] : memref<16x128xf32, #tpu.memory_space<vmem>>, vector<16x128xf32>
    %c0_1 = arith.constant 0 : index
    %c0_2 = arith.constant 0 : index
    %1 = vector.load %arg5[%c0_1, %c0_2] : memref<16x16xf32, #tpu.memory_space<vmem>>, vector<16x16xf32>
    %cst = arith.constant dense<0.000000e+00> : vector<16xf32>
    %2 = vector.multi_reduction <add>, %1, %cst [1] : vector<16x16xf32> to vector<16xf32>
    %3 = vector.shape_cast %2 : vector<16xf32> to vector<16x1xf32>
    %cst_3 = arith.constant 1.000000e+00 : f32
    %4 = vector.broadcast %cst_3 : f32 to vector<16x1xf32>
    %5 = arith.maximumf %3, %4 : vector<16x1xf32>
    %6 = math.rsqrt %5 : vector<16x1xf32>
    %c0_4 = arith.constant 0 : index
    %c0_5 = arith.constant 0 : index
    %7 = vector.load %arg1[%c0_4, %c0_5] : memref<128x128xf32, #tpu.memory_space<vmem>>, vector<128x128xf32>
    %cst_6 = arith.constant dense<0.000000e+00> : vector<16x128xf32>
    %8 = tpu.matmul %0, %7, %cst_6 {dimension_numbers = #tpu.dot_dimension_numbers<[1], [0], [0], [1], [0, 0, 1, 1], [], []>} : vector<16x128xf32>, vector<128x128xf32>, vector<16x128xf32> -> vector<16x128xf32>
    %9 = vector.broadcast %6 : vector<16x1xf32> to vector<16x128xf32>
    %10 = arith.mulf %9, %8 : vector<16x128xf32>
    %cst_7 = arith.constant dense<0.000000e+00> : vector<16x128xf32>
    %11 = tpu.matmul %1, %10, %cst_7 {dimension_numbers = #tpu.dot_dimension_numbers<[1], [0], [0], [1], [0, 0, 1, 1], [], []>} : vector<16x16xf32>, vector<16x128xf32>, vector<16x128xf32> -> vector<16x128xf32>
    %12 = vector.broadcast %6 : vector<16x1xf32> to vector<16x128xf32>
    %13 = arith.mulf %12, %11 : vector<16x128xf32>
    %c0_8 = arith.constant 0 : index
    %c0_9 = arith.constant 0 : index
    %14 = vector.load %arg2[%c0_8, %c0_9] : memref<1x128xf32, #tpu.memory_space<vmem>>, vector<1x128xf32>
    %15 = vector.broadcast %14 : vector<1x128xf32> to vector<16x128xf32>
    %16 = arith.addf %13, %15 : vector<16x128xf32>
    %cst_10 = arith.constant 0.000000e+00 : f32
    %17 = vector.broadcast %cst_10 : f32 to vector<16x128xf32>
    %18 = arith.maximumf %16, %17 : vector<16x128xf32>
    %c0_11 = arith.constant 0 : index
    %c0_12 = arith.constant 0 : index
    %19 = vector.load %arg3[%c0_11, %c0_12] : memref<128x128xf32, #tpu.memory_space<vmem>>, vector<128x128xf32>
    %cst_13 = arith.constant dense<0.000000e+00> : vector<16x128xf32>
    %20 = tpu.matmul %18, %19, %cst_13 {dimension_numbers = #tpu.dot_dimension_numbers<[1], [0], [0], [1], [0, 0, 1, 1], [], []>} : vector<16x128xf32>, vector<128x128xf32>, vector<16x128xf32> -> vector<16x128xf32>
    %21 = vector.broadcast %6 : vector<16x1xf32> to vector<16x128xf32>
    %22 = arith.mulf %21, %20 : vector<16x128xf32>
    %cst_14 = arith.constant dense<0.000000e+00> : vector<16x128xf32>
    %23 = tpu.matmul %1, %22, %cst_14 {dimension_numbers = #tpu.dot_dimension_numbers<[1], [0], [0], [1], [0, 0, 1, 1], [], []>} : vector<16x16xf32>, vector<16x128xf32>, vector<16x128xf32> -> vector<16x128xf32>
    %24 = vector.broadcast %6 : vector<16x1xf32> to vector<16x128xf32>
    %25 = arith.mulf %24, %23 : vector<16x128xf32>
    %c0_15 = arith.constant 0 : index
    %c0_16 = arith.constant 0 : index
    %26 = vector.load %arg4[%c0_15, %c0_16] : memref<1x128xf32, #tpu.memory_space<vmem>>, vector<1x128xf32>
    %27 = vector.broadcast %26 : vector<1x128xf32> to vector<16x128xf32>
    %28 = arith.addf %25, %27 : vector<16x128xf32>
    %c0_17 = arith.constant 0 : index
    %c0_18 = arith.constant 0 : index
    %29 = vector.load %arg6[%c0_17, %c0_18] : memref<16x128xf32, #tpu.memory_space<vmem>>, vector<16x128xf32>
    tpu.vector_store %arg6[%c0_17, %c0_18], %28 {strides = array<i32>} : memref<16x128xf32, #tpu.memory_space<vmem>>, vector<16x128xf32>,
    return
  }
}

</mosaic_0001>

<bundles_post_ra>
// kernel: gcn_forward_pallas.1
= control target key start
LH: loop header
LB: loop body
LE: loop exit
PB: predicated region body
PF: predicated region fallthrough
CT: control target
= control target key end

     0   :  { %vm27_vm0 = vcmask 130048   ;;  %s726_s1 = inlined_call_operand.vmem [shape: f32[128,128], index: 1, kind: input, shape index: {}]   ;;  %s727_s0 = inlined_call_operand.vmem [shape: f32[16,128], index: 0, kind: input, shape index: {}]   ;;  %s728_s5 = inlined_call_operand.vmem [shape: f32[16,16], index: 5, kind: input, shape index: {}]   ;;  %s729_s3 = inlined_call_operand.vmem [shape: f32[128,128], index: 3, kind: input, shape index: {}]   ;;  %s730_s2 = inlined_call_operand.vmem [shape: f32[1,128], index: 2, kind: input, shape index: {}]   ;;  %s731_s4 = inlined_call_operand.vmem [shape: f32[1,128], index: 4, kind: input, shape index: {}]   ;;  %s732_s6 = inlined_call_operand.vmem [shape: f32[16,128], index: 6, kind: output, shape index: {}]  }
   0x1   :  { %v53_v0 = vld [vmem:[%s726_s1 + $0x78] sm:$0xff]  ;;  %v52_v1 = vld [vmem:[%s726_s1 + $0x70] sm:$0xff]  ;;  %v51_v2 = vld [vmem:[%s726_s1 + $0x68] sm:$0xff] }
   0x2   :  { %460 = vmatprep.subr.mxu0 %v53_v0  ;;  %v50_v3 = vld [vmem:[%s726_s1 + $0x60] sm:$0xff]  ;;  %v49_v5 = vld [vmem:[%s726_s1 + $0x58] sm:$0xff]  ;;  %v604_v6 = vld [vmem:[%s728_s5 + $0x8] sm:$0xff] }
   0x3   :  { %461 = vmatpush3.msra.mxu0 %v53_v0  ;;  %v23_v4 = vld [vmem:[%s727_s0] sm:$0xff]  ;;  %v31_v8 = vsel %vm27_vm0, %v604_v6, 0.0  ;;  %v48_v9 = vld [vmem:[%s726_s1 + $0x50] sm:$0xff]  ;;  %v47_v11 = vld [vmem:[%s726_s1 + $0x48] sm:$0xff] }
   0x4   :  { %462 = vmatprep.subr.mxu0 %v52_v1  ;;  %492 = vmatprep.mubr.f32.mxu0 %v23_v4  ;;  %v25_v7 = vld [vmem:[%s728_s5] sm:$0xff]  ;;  %v45_v13 = vld [vmem:[%s726_s1 + $0x38] sm:$0xff]  ;;  %v44_v14 = vld [vmem:[%s726_s1 + $0x30] sm:$0xff] }
   0x5   :  { %463 = vmatpush3.msra.mxu0 %v52_v1  ;;  %499 = vmatprep.mubr.msk.f32.mxu1 %vm27_vm0, %v25_v7  ;;  %v28_v10 = vsel %vm27_vm0, %v25_v7, 0.0  ;;  %v46_v12 = vld [vmem:[%s726_s1 + $0x40] sm:$0xff]  ;;  %v43_v15 = vld [vmem:[%s726_s1 + $0x28] sm:$0xff]  ;;  %v41_v17 = vld [vmem:[%s726_s1 + $0x18] sm:$0xff] }
   0x6   :  { %464 = vmatprep.subr.mxu0 %v51_v2  ;;  %32 = vadd.xlane.f32.xlu0 %v31_v8  ;;  %v42_v16 = vld [vmem:[%s726_s1 + $0x20] sm:$0xff]  ;;  %v40_v18 = vld [vmem:[%s726_s1 + $0x10] sm:$0xff]  ;;  %v39_v19 = vld [vmem:[%s726_s1 + $0x8] sm:$0xff] }
   0x7   :  { %465 = vmatpush3.msra.mxu0 %v51_v2  ;;  %v38_v20 = vld [vmem:[%s726_s1] sm:$0xff]  ;;  %v24_v21 = vld [vmem:[%s727_s0 + $0x8] sm:$0xff]  ;;  %v240_v32 = vld [vmem:[%s729_s3 + $0x78] sm:$0xff] }
   0x8   :  { %466 = vmatprep.subr.mxu0 %v50_v3  ;;  %v239_v33 = vld [vmem:[%s729_s3 + $0x70] sm:$0xff]  ;;  %v238_v34 = vld [vmem:[%s729_s3 + $0x68] sm:$0xff]  ;;  %v237_v35 = vld [vmem:[%s729_s3 + $0x60] sm:$0xff] }
   0x9   :  { %467 = vmatpush3.msra.mxu0 %v50_v3  ;;  %v236_v36 = vld [vmem:[%s729_s3 + $0x58] sm:$0xff]  ;;  %v235_v37 = vld [vmem:[%s729_s3 + $0x50] sm:$0xff]  ;;  %v234_v38 = vld [vmem:[%s729_s3 + $0x48] sm:$0xff] }
   0xa   :  { %468 = vmatprep.subr.mxu0 %v49_v5  ;;  %29 = vadd.xlane.f32.xlu0 %v28_v10  ;;  %v233_v39 = vld [vmem:[%s729_s3 + $0x40] sm:$0xff]  ;;  %v232_v40 = vld [vmem:[%s729_s3 + $0x38] sm:$0xff]  ;;  %v231_v41 = vld [vmem:[%s729_s3 + $0x30] sm:$0xff] }
   0xb   :  { %469 = vmatpush3.msra.mxu0 %v49_v5  ;;  %v230_v42 = vld [vmem:[%s729_s3 + $0x28] sm:$0xff]  ;;  %v229_v43 = vld [vmem:[%s729_s3 + $0x20] sm:$0xff]  ;;  %v228_v44 = vld [vmem:[%s729_s3 + $0x18] sm:$0xff] }
   0xc   :  { %470 = vmatprep.subr.mxu0 %v48_v9  ;;  %v227_v45 = vld [vmem:[%s729_s3 + $0x10] sm:$0xff]  ;;  %v226_v46 = vld [vmem:[%s729_s3 + $0x8] sm:$0xff]  ;;  %v225_v47 = vld [vmem:[%s729_s3] sm:$0xff] }
   0xd   :  { %471 = vmatpush3.msra.mxu0 %v48_v9  ;;  %v412_v50 = vld [vmem:[%s730_s2] ss:$0 sm:$0xff] }
   0xe   :  { %472 = vmatprep.subr.mxu0 %v47_v11  ;;  %v415_v62 = vld [vmem:[%s731_s4] ss:$0 sm:$0xff] }
   0xf   :  { %473 = vmatpush3.msra.mxu0 %v47_v11 }
  0x10   :  { %474 = vmatprep.subr.mxu0 %v46_v12 }
  0x11   :  { %475 = vmatpush3.msra.mxu0 %v46_v12 }
  0x12   :  { %476 = vmatprep.subr.mxu0 %v45_v13 }
  0x13   :  { %477 = vmatpush3.msra.mxu0 %v45_v13 }
  0x14   :  { %478 = vmatprep.subr.mxu0 %v44_v14 }
  0x15   :  { %479 = vmatpush3.msra.mxu0 %v44_v14 }
  0x16   :  { %480 = vmatprep.subr.mxu0 %v43_v15 }
  0x17   :  { %481 = vmatpush3.msra.mxu0 %v43_v15 }
  0x18   :  { %482 = vmatprep.subr.mxu0 %v42_v16 }
  0x19   :  { %483 = vmatpush3.msra.mxu0 %v42_v16 }
  0x1a   :  { %484 = vmatprep.subr.mxu0 %v41_v17 }
  0x1b   :  { %485 = vmatpush3.msra.mxu0 %v41_v17 }
  0x1c   :  { %486 = vmatprep.subr.mxu0 %v40_v18 }
  0x1d   :  { %487 = vmatpush3.msra.mxu0 %v40_v18 }
  0x1e   :  { %488 = vmatprep.subr.mxu0 %v39_v19 }
  0x1f   :  { %489 = vmatpush3.msra.mxu0 %v39_v19 }
  0x20   :  { %490 = vmatprep.subr.mxu0 %v38_v20 }
  0x21   :  { %491 = vmatpush3.msra.mxu0 %v38_v20 }
  0x22   :  { %493 = vmatmul.mubr.f32.vlgmr.msra.gmra.mxu0 %v24_v21 }
  0x23   :  { %541 = vmatprep.mubr.msk.f32.mxu0 %vm27_vm0, %v25_v7 }
  0x8f   :  { %v33_v22 = vpop.xlane.xlu0 %32 }
  0x90   :  { %v35_v24 = vmax.f32 %v33_v22, 1.0 }
  0x92   :  { %544 = vrsqrt.f32 %v35_v24 }
  0x93   :  { %v30_v23 = vpop.xlane.xlu0 %29 }
  0x94   :  { %v34_v25 = vmax.f32 %v30_v23, 1.0 }
  0x96   :  { %546 = vrsqrt.f32 %v34_v25 }
  0x9f   :  { %v650_v26 = vpop.eup %544 }
  0xa3   :  { %v652_v27 = vpop.eup %546 }
  0xe2   :  { %v494_v28 = vpop.f32.mrf.mxu0 }
  0xe3   :  { %v130_v29 = vmul.f32 %v650_v26, %v494_v28 }
  0xe4   :  { %v120_v30 = vpop.f32.mrf.mxu0 }
  0xe5   :  { %v129_v31 = vmul.f32 %v652_v27, %v120_v30  ;;  %495 = vmatprep.subr.mxu1 %v130_v29 }
  0xe6   :  { %496 = vmatpush3.msra.mxu1 %v130_v29 }
  0xe7   :  { %497 = vmatprep.subr.mxu1 %v129_v31 }
  0xe8   :  { %498 = vmatpush3.msra.mxu1 %v129_v31 }
  0xe9   :  { %500 = vmatmul.mubr.msk.f32.vlgmr.msra.gmra.mxu1 %vm27_vm0, %v604_v6  ;;  %502 = vmatprep.subr.mxu1 %v240_v32 }
  0xea   :  { %503 = vmatpush3.msra.mxu1 %v240_v32 }
  0xeb   :  { %504 = vmatprep.subr.mxu1 %v239_v33 }
  0xec   :  { %505 = vmatpush3.msra.mxu1 %v239_v33 }
  0xed   :  { %506 = vmatprep.subr.mxu1 %v238_v34 }
  0xee   :  { %507 = vmatpush3.msra.mxu1 %v238_v34 }
  0xef   :  { %508 = vmatprep.subr.mxu1 %v237_v35 }
  0xf0   :  { %509 = vmatpush3.msra.mxu1 %v237_v35 }
  0xf1   :  { %510 = vmatprep.subr.mxu1 %v236_v36 }
  0xf2   :  { %511 = vmatpush3.msra.mxu1 %v236_v36 }
  0xf3   :  { %512 = vmatprep.subr.mxu1 %v235_v37 }
  0xf4   :  { %513 = vmatpush3.msra.mxu1 %v235_v37 }
  0xf5   :  { %514 = vmatprep.subr.mxu1 %v234_v38 }
  0xf6   :  { %515 = vmatpush3.msra.mxu1 %v234_v38 }
  0xf7   :  { %516 = vmatprep.subr.mxu1 %v233_v39 }
  0xf8   :  { %517 = vmatpush3.msra.mxu1 %v233_v39 }
  0xf9   :  { %518 = vmatprep.subr.mxu1 %v232_v40 }
  0xfa   :  { %519 = vmatpush3.msra.mxu1 %v232_v40 }
  0xfb   :  { %520 = vmatprep.subr.mxu1 %v231_v41 }
  0xfc   :  { %521 = vmatpush3.msra.mxu1 %v231_v41 }
  0xfd   :  { %522 = vmatprep.subr.mxu1 %v230_v42 }
  0xfe   :  { %523 = vmatpush3.msra.mxu1 %v230_v42 }
  0xff   :  { %524 = vmatprep.subr.mxu1 %v229_v43 }
 0x100   :  { %525 = vmatpush3.msra.mxu1 %v229_v43 }
 0x101   :  { %526 = vmatprep.subr.mxu1 %v228_v44 }
 0x102   :  { %527 = vmatpush3.msra.mxu1 %v228_v44 }
 0x103   :  { %528 = vmatprep.subr.mxu1 %v227_v45 }
 0x104   :  { %529 = vmatpush3.msra.mxu1 %v227_v45 }
 0x105   :  { %530 = vmatprep.subr.mxu1 %v226_v46 }
 0x106   :  { %531 = vmatpush3.msra.mxu1 %v226_v46 }
 0x107   :  { %532 = vmatprep.subr.mxu1 %v225_v47 }
 0x108   :  { %533 = vmatpush3.msra.mxu1 %v225_v47 }
 0x1a9   :  { %v501_v48 = vpop.f32.mrf.mxu1 }
 0x1aa   :  { %v213_v49 = vmul.f32 %v650_v26, %v501_v48 }
 0x1ab   :  { %v203_v51 = vpop.f32.mrf.mxu1 }
 0x1ac   :  { %v212_v52 = vmul.f32 %v652_v27, %v203_v51  ;;  %v222_v53 = vadd.f32 %v412_v50, %v213_v49 }
 0x1ae   :  { %v221_v54 = vadd.f32 %v412_v50, %v212_v52  ;;  %v224_v56 = vmax.f32 %v222_v53, 0.0 }
 0x1b0   :  { %v223_v55 = vmax.f32 %v221_v54, 0.0 }
 0x1b2   :  { %534 = vmatprep.mubr.f32.mxu1 %v223_v55 }
 0x1b3   :  { %535 = vmatmul.mubr.f32.vlgmr.msra.gmra.mxu1 %v224_v56 }
 0x273   :  { %v536_v57 = vpop.f32.mrf.mxu1 }
 0x274   :  { %v317_v58 = vmul.f32 %v650_v26, %v536_v57 }
 0x275   :  { %v307_v59 = vpop.f32.mrf.mxu1 }
 0x276   :  { %v316_v60 = vmul.f32 %v652_v27, %v307_v59  ;;  %537 = vmatprep.subr.mxu0 %v317_v58 }
 0x277   :  { %538 = vmatpush3.msra.mxu0 %v317_v58 }
 0x278   :  { %539 = vmatprep.subr.mxu0 %v316_v60 }
 0x279   :  { %540 = vmatpush3.msra.mxu0 %v316_v60 }
 0x27a   :  { %542 = vmatmul.mubr.msk.f32.vlgmr.msra.gmra.mxu0 %vm27_vm0, %v604_v6 }
 0x33a   :  { %v543_v61 = vpop.f32.mrf.mxu0 }
 0x33b   :  { %v394_v63 = vmul.f32 %v650_v26, %v543_v61 }
 0x33c   :  { %v384_v0 = vpop.f32.mrf.mxu0 }
 0x33d   :  { %v403_v1 = vadd.f32 %v415_v62, %v394_v63  ;;  %v393_v2 = vmul.f32 %v652_v27, %v384_v0 }
 0x33f   :  { %405 = vst [vmem:[%s732_s6 + $0x8] sm:$0xff] %v403_v1  ;;  %v402_v3 = vadd.f32 %v415_v62, %v393_v2 }
 0x341   :  { %404 = vst [vmem:[%s732_s6] sm:$0xff] %v402_v3 }

</bundles_post_ra>
